<compile_context>
chip_gen: v5e
topology: v5e:2x2
jax: 0.10.0
libtpu: 0.0.40
codegen_flags: <defaults>
</compile_context>

<pallas_src>
import functools

import jax
import jax.numpy as jnp
from jax.experimental import pallas as pl
from jax.experimental.pallas import tpu as pltpu


def _make_kernel(*, normalize, has_bias, eps, slope, inv_m):
    """Builds the fused conv-matmul + InstanceNorm + LeakyReLU kernel.

    Refs (per grid step, bn = samples per block):
      p_ref : (bn, KKC, M)    im2col patches, compute dtype (bf16 by default)
      w_ref : (C_out, KKC)    conv weight as a matrix, compute dtype
      b_ref : (C_out, 1)      conv bias, f32 (only when has_bias)
      o_ref : (bn, C_out, M)  output (NCHW-flattened spatial)
    """

    def compute(p_ref, w_ref, o_ref, b_ref=None):
        w = w_ref[...]                                  # (C_out, KKC)
        bn = o_ref.shape[0]
        for b in range(bn):                             # small, unrolled
            # Conv hot path: one MXU matmul per sample, f32 accumulation.
            acc = jnp.dot(w, p_ref[b], preferred_element_type=jnp.float32)
            if has_bias:                                # only when normalize=False
                acc = acc + b_ref[...]                  # (C_out,1) bcast over M
            if normalize:
                # Single-pass biased stats over spatial positions (lane axis).
                s = jnp.sum(acc, axis=-1, keepdims=True)            # (C_out, 1)
                ss = jnp.sum(acc * acc, axis=-1, keepdims=True)     # (C_out, 1)
                mean = s * inv_m
                var = jnp.maximum(ss * inv_m - mean * mean, 0.0)
                acc = (acc - mean) * jax.lax.rsqrt(var + eps)
            # LeakyReLU(slope)
            o_ref[b] = jnp.where(acc >= 0, acc, slope * acc).astype(o_ref.dtype)

    if has_bias:
        def kernel(p_ref, w_ref, b_ref, o_ref):
            compute(p_ref, w_ref, o_ref, b_ref)
    else:
        def kernel(p_ref, w_ref, o_ref):
            compute(p_ref, w_ref, o_ref)
    return kernel


def discriminator_layer(x, weight, bias, *, normalize=True,
                        stride=2, padding=1, eps=1e-5, slope=0.2,
                        compute_dtype=jnp.bfloat16,
                        vmem_block_budget=8 * 1024 * 1024):
    """x: (N, C_in, H, W) f32 NCHW.  weight: (C_out, C_in, 3, 3).  bias: (C_out,)."""
    N, C_in, H, W = x.shape
    C_out, _, K, _ = weight.shape
    H_out = (H + 2 * padding - K) // stride + 1
    W_out = (W + 2 * padding - K) // stride + 1
    M = H_out * W_out
    KKC = C_in * K * K

    # --- glue: NCHW-native im2col (no NCHW<->NHWC transposes), in bf16 ---
    x_c = x.astype(compute_dtype)
    x_pad = jnp.pad(x_c, ((0, 0), (0, 0), (padding, padding), (padding, padding)))
    cols = []
    for kh in range(K):
        for kw in range(K):
            cols.append(
                x_pad[:, :, kh:kh + stride * H_out:stride, kw:kw + stride * W_out:stride])
    # reduction-axis ordering (c_in, kh, kw) matches weight.reshape(C_out, C_in*K*K)
    patches = jnp.stack(cols, axis=2).reshape(N, KKC, M)
    # TODO(synk): for very large activations, fuse patch extraction into the
    # kernel (padded input via memory_space=pl.ANY + 9 shifted matmuls, M-tiled
    # with two-pass sum/sumsq stats) to remove this im2col HBM round trip.

    w_mat = weight.reshape(C_out, KKC).astype(compute_dtype)

    has_bias = not normalize            # bias cancels exactly under InstanceNorm
    inv_m = 1.0 / float(M)

    # --- batch folding: largest divisor of N whose block fits the VMEM budget ---
    comp_bytes = jnp.dtype(compute_dtype).itemsize
    out_bytes = jnp.dtype(x.dtype).itemsize
    per_sample = KKC * M * comp_bytes + C_out * M * out_bytes
    bn = 1
    for d in range(1, N + 1):
        if N % d == 0 and 2 * d * per_sample <= vmem_block_budget:   # x2: double buffer
            bn = d
    grid = (N // bn,)

    in_specs = [
        pl.BlockSpec((bn, KKC, M), lambda i: (i, 0, 0)),
        pl.BlockSpec((C_out, KKC), lambda i: (0, 0)),
    ]
    inputs = [patches, w_mat]
    if has_bias:
        in_specs.append(pl.BlockSpec((C_out, 1), lambda i: (0, 0)))
        inputs.append(bias.astype(jnp.float32).reshape(C_out, 1))

    kernel = _make_kernel(normalize=normalize, has_bias=has_bias,
                          eps=eps, slope=slope, inv_m=inv_m)

    out = pl.pallas_call(
        kernel,
        out_shape=jax.ShapeDtypeStruct((N, C_out, M), x.dtype),
        grid_spec=pltpu.PrefetchScalarGridSpec(
            num_scalar_prefetch=0,
            grid=grid,
            in_specs=in_specs,
            out_specs=pl.BlockSpec((bn, C_out, M), lambda i: (i, 0, 0)),
        ),
        compiler_params=pltpu.CompilerParams(
            dimension_semantics=("parallel",),
            vmem_limit_bytes=48 * 1024 * 1024,
        ),
    )(*inputs)

    # (N, C_out, M) -> NCHW directly (pure reshape, no transpose)
    return out.reshape(N, C_out, H_out, W_out)


def _reference(x, weight, bias, *, normalize=True, eps=1e-5, slope=0.2):
    """Pure-JAX f32 reference mirroring the PyTorch module."""
    y = jax.lax.conv_general_dilated(
        x, weight, window_strides=(2, 2), padding=((1, 1), (1, 1)),
        dimension_numbers=("NCHW", "OIHW", "NCHW"))
    y = y + bias.reshape(1, -1, 1, 1)
    if normalize:
        mean = jnp.mean(y, axis=(2, 3), keepdims=True)
        var = jnp.mean((y - mean) ** 2, axis=(2, 3), keepdims=True)
        y = (y - mean) * jax.lax.rsqrt(var + eps)
    return jnp.where(y >= 0, y, slope * y)


if __name__ == "__main__":
    key = jax.random.PRNGKey(0)
    k_x, k_w, k_b = jax.random.split(key, 3)

    N, C_in, H, W = 2, 4, 16, 16
    C_out = 8

    x = jax.random.normal(k_x, (N, C_in, H, W), dtype=jnp.float32)
    weight = 0.1 * jax.random.normal(k_w, (C_out, C_in, 3, 3), dtype=jnp.float32)
    bias = 0.1 * jax.random.normal(k_b, (C_out,), dtype=jnp.float32)

    ref = _reference(x, weight, bias, normalize=True)

    # 1) normalize=True, f32 compute path: exact semantics check.
    out_f32 = jax.block_until_ready(
        discriminator_layer(x, weight, bias, normalize=True,
                            compute_dtype=jnp.float32))
    assert out_f32.shape == (N, C_out, 8, 8), out_f32.shape
    assert jnp.allclose(out_f32, ref, atol=1e-4, rtol=1e-4), \
        float(jnp.max(jnp.abs(out_f32 - ref)))

    # 2) normalize=True, default bf16 MXU path: loose tolerance (bf16 inputs).
    out_bf16 = jax.block_until_ready(
        discriminator_layer(x, weight, bias, normalize=True))
    assert out_bf16.shape == (N, C_out, 8, 8), out_bf16.shape
    assert jnp.allclose(out_bf16, ref, atol=5e-2, rtol=5e-2), \
        float(jnp.max(jnp.abs(out_bf16 - ref)))

    # 3) normalize=False path (bias active), f32 compute: exact check.
    ref_nb = _reference(x, weight, bias, normalize=False)
    out_nb = jax.block_until_ready(
        discriminator_layer(x, weight, bias, normalize=False,
                            compute_dtype=jnp.float32))
    assert jnp.allclose(out_nb, ref_nb, atol=1e-4, rtol=1e-4), \
        float(jnp.max(jnp.abs(out_nb - ref_nb)))

    print("KERNEL_OK")
</pallas_src>

<mosaic_0001>
module attributes {stable_mosaic.version = 11 : i64} {
  func.func @kernel(%arg0: i32, %arg1: memref<2x36x64xf32, #tpu.memory_space<vmem>>, %arg2: memref<8x36xf32, #tpu.memory_space<vmem>>, %arg3: memref<2x8x64xf32, #tpu.memory_space<vmem>>) attributes {dimension_semantics = [#tpu.dimension_semantics<parallel>], iteration_bounds = array<i64: 1>, scalar_prefetch = 0 : i64, scratch_operands = 0 : i64, tpu.core_type = #tpu.core_type<tc>, window_params = [{transform_indices = @transform_0, window_bounds = array<i64: 2, 36, 64>}, {pipeline_mode = #tpu.pipeline_mode<synchronous>, transform_indices = @transform_1, window_bounds = array<i64: 8, 36>}, {transform_indices = @transform_2, window_bounds = array<i64: 2, 8, 64>}]} {
    %c0 = arith.constant 0 : index
    %c0_0 = arith.constant 0 : index
    %0 = vector.load %arg2[%c0, %c0_0] : memref<8x36xf32, #tpu.memory_space<vmem>>, vector<8x36xf32>
    %c0_1 = arith.constant 0 : index
    %c0_2 = arith.constant 0 : index
    %c0_3 = arith.constant 0 : index
    %1 = vector.load %arg1[%c0_1, %c0_2, %c0_3] : memref<2x36x64xf32, #tpu.memory_space<vmem>>, vector<1x36x64xf32>
    %2 = vector.shape_cast %1 : vector<1x36x64xf32> to vector<36x64xf32>
    %cst = arith.constant dense<0.000000e+00> : vector<8x64xf32>
    %3 = tpu.matmul %0, %2, %cst {dimension_numbers = #tpu.dot_dimension_numbers<[1], [0], [0], [1], [0, 0, 1, 1], [], []>} : vector<8x36xf32>, vector<36x64xf32>, vector<8x64xf32> -> vector<8x64xf32>
    %cst_4 = arith.constant dense<0.000000e+00> : vector<8xf32>
    %4 = vector.multi_reduction <add>, %3, %cst_4 [1] : vector<8x64xf32> to vector<8xf32>
    %5 = vector.shape_cast %4 : vector<8xf32> to vector<8x1xf32>
    %6 = arith.mulf %3, %3 : vector<8x64xf32>
    %cst_5 = arith.constant dense<0.000000e+00> : vector<8xf32>
    %7 = vector.multi_reduction <add>, %6, %cst_5 [1] : vector<8x64xf32> to vector<8xf32>
    %8 = vector.shape_cast %7 : vector<8xf32> to vector<8x1xf32>
    %cst_6 = arith.constant 1.562500e-02 : f32
    %9 = vector.broadcast %cst_6 : f32 to vector<8x1xf32>
    %10 = arith.mulf %5, %9 : vector<8x1xf32>
    %cst_7 = arith.constant 1.562500e-02 : f32
    %11 = vector.broadcast %cst_7 : f32 to vector<8x1xf32>
    %12 = arith.mulf %8, %11 : vector<8x1xf32>
    %13 = arith.mulf %10, %10 : vector<8x1xf32>
    %14 = arith.subf %12, %13 : vector<8x1xf32>
    %cst_8 = arith.constant 0.000000e+00 : f32
    %15 = vector.broadcast %cst_8 : f32 to vector<8x1xf32>
    %16 = arith.maximumf %14, %15 : vector<8x1xf32>
    %17 = vector.broadcast %10 : vector<8x1xf32> to vector<8x64xf32>
    %18 = arith.subf %3, %17 : vector<8x64xf32>
    %cst_9 = arith.constant 9.99999974E-6 : f32
    %19 = vector.broadcast %cst_9 : f32 to vector<8x1xf32>
    %20 = arith.addf %16, %19 : vector<8x1xf32>
    %21 = math.rsqrt %20 : vector<8x1xf32>
    %22 = vector.broadcast %21 : vector<8x1xf32> to vector<8x64xf32>
    %23 = arith.mulf %18, %22 : vector<8x64xf32>
    %cst_10 = arith.constant 0.000000e+00 : f32
    %24 = vector.broadcast %cst_10 : f32 to vector<8x64xf32>
    %25 = arith.cmpf oge, %23, %24 : vector<8x64xf32>
    %cst_11 = arith.constant 2.000000e-01 : f32
    %26 = vector.broadcast %cst_11 : f32 to vector<8x64xf32>
    %27 = arith.mulf %26, %23 : vector<8x64xf32>
    %28 = arith.select %25, %23, %27 : vector<8x64xi1>, vector<8x64xf32>
    %c0_12 = arith.constant 0 : index
    %c0_13 = arith.constant 0 : index
    %c0_14 = arith.constant 0 : index
    %29 = vector.load %arg3[%c0_12, %c0_13, %c0_14] : memref<2x8x64xf32, #tpu.memory_space<vmem>>, vector<1x8x64xf32>
    %30 = vector.shape_cast %29 : vector<1x8x64xf32> to vector<8x64xf32>
    %31 = vector.shape_cast %28 : vector<8x64xf32> to vector<1x8x64xf32>
    tpu.vector_store %arg3[%c0_12, %c0_13, %c0_14], %31 {strides = array<i32>} : memref<2x8x64xf32, #tpu.memory_space<vmem>>, vector<1x8x64xf32>,
    %c1 = arith.constant 1 : index
    %c0_15 = arith.constant 0 : index
    %c0_16 = arith.constant 0 : index
    %32 = vector.load %arg1[%c1, %c0_15, %c0_16] : memref<2x36x64xf32, #tpu.memory_space<vmem>>, vector<1x36x64xf32>
    %33 = vector.shape_cast %32 : vector<1x36x64xf32> to vector<36x64xf32>
    %cst_17 = arith.constant dense<0.000000e+00> : vector<8x64xf32>
    %34 = tpu.matmul %0, %33, %cst_17 {dimension_numbers = #tpu.dot_dimension_numbers<[1], [0], [0], [1], [0, 0, 1, 1], [], []>} : vector<8x36xf32>, vector<36x64xf32>, vector<8x64xf32> -> vector<8x64xf32>
    %cst_18 = arith.constant dense<0.000000e+00> : vector<8xf32>
    %35 = vector.multi_reduction <add>, %34, %cst_18 [1] : vector<8x64xf32> to vector<8xf32>
    %36 = vector.shape_cast %35 : vector<8xf32> to vector<8x1xf32>
    %37 = arith.mulf %34, %34 : vector<8x64xf32>
    %cst_19 = arith.constant dense<0.000000e+00> : vector<8xf32>
    %38 = vector.multi_reduction <add>, %37, %cst_19 [1] : vector<8x64xf32> to vector<8xf32>
    %39 = vector.shape_cast %38 : vector<8xf32> to vector<8x1xf32>
    %cst_20 = arith.constant 1.562500e-02 : f32
    %40 = vector.broadcast %cst_20 : f32 to vector<8x1xf32>
    %41 = arith.mulf %36, %40 : vector<8x1xf32>
    %cst_21 = arith.constant 1.562500e-02 : f32
    %42 = vector.broadcast %cst_21 : f32 to vector<8x1xf32>
    %43 = arith.mulf %39, %42 : vector<8x1xf32>
    %44 = arith.mulf %41, %41 : vector<8x1xf32>
    %45 = arith.subf %43, %44 : vector<8x1xf32>
    %cst_22 = arith.constant 0.000000e+00 : f32
    %46 = vector.broadcast %cst_22 : f32 to vector<8x1xf32>
    %47 = arith.maximumf %45, %46 : vector<8x1xf32>
    %48 = vector.broadcast %41 : vector<8x1xf32> to vector<8x64xf32>
    %49 = arith.subf %34, %48 : vector<8x64xf32>
    %cst_23 = arith.constant 9.99999974E-6 : f32
    %50 = vector.broadcast %cst_23 : f32 to vector<8x1xf32>
    %51 = arith.addf %47, %50 : vector<8x1xf32>
    %52 = math.rsqrt %51 : vector<8x1xf32>
    %53 = vector.broadcast %52 : vector<8x1xf32> to vector<8x64xf32>
    %54 = arith.mulf %49, %53 : vector<8x64xf32>
    %cst_24 = arith.constant 0.000000e+00 : f32
    %55 = vector.broadcast %cst_24 : f32 to vector<8x64xf32>
    %56 = arith.cmpf oge, %54, %55 : vector<8x64xf32>
    %cst_25 = arith.constant 2.000000e-01 : f32
    %57 = vector.broadcast %cst_25 : f32 to vector<8x64xf32>
    %58 = arith.mulf %57, %54 : vector<8x64xf32>
    %59 = arith.select %56, %54, %58 : vector<8x64xi1>, vector<8x64xf32>
    %c1_26 = arith.constant 1 : index
    %c0_27 = arith.constant 0 : index
    %c0_28 = arith.constant 0 : index
    %60 = vector.load %arg3[%c1_26, %c0_27, %c0_28] : memref<2x8x64xf32, #tpu.memory_space<vmem>>, vector<1x8x64xf32>
    %61 = vector.shape_cast %60 : vector<1x8x64xf32> to vector<8x64xf32>
    %62 = vector.shape_cast %59 : vector<8x64xf32> to vector<1x8x64xf32>
    tpu.vector_store %arg3[%c1_26, %c0_27, %c0_28], %62 {strides = array<i32>} : memref<2x8x64xf32, #tpu.memory_space<vmem>>, vector<1x8x64xf32>,
    return
  }
  func.func @transform_0(%arg0: i32) -> (i32, i32, i32) {
    %c0_i32 = arith.constant 0 : i32
    %c0_i32_0 = arith.constant 0 : i32
    %c0_i32_1 = arith.constant 0 : i32
    return %arg0, %c0_i32, %c0_i32_0 : i32, i32, i32
  }
  func.func @transform_1(%arg0: i32) -> (i32, i32) {
    %c0_i32 = arith.constant 0 : i32
    %c0_i32_0 = arith.constant 0 : i32
    %c0_i32_1 = arith.constant 0 : i32
    return %c0_i32, %c0_i32_0 : i32, i32
  }
  func.func @transform_2(%arg0: i32) -> (i32, i32, i32) {
    %c0_i32 = arith.constant 0 : i32
    %c0_i32_0 = arith.constant 0 : i32
    %c0_i32_1 = arith.constant 0 : i32
    return %arg0, %c0_i32, %c0_i32_0 : i32, i32, i32
  }
}

</mosaic_0001>

<bundles_post_ra>
// kernel: tpu_custom_call.1
= control target key start
LH: loop header
LB: loop body
LE: loop exit
PB: predicated region body
PF: predicated region fallthrough
CT: control target
= control target key end

     0   :  { %vm22_vm0 = vcmask 1043456   ;;  %s255_s0 = inlined_call_operand.vmem [shape: f32[2,36,64], index: 0, kind: input, shape index: {}]   ;;  %s256_s1 = inlined_call_operand.vmem [shape: f32[8,36], index: 1, kind: input, shape index: {}]   ;;  %s257_s2 = inlined_call_operand.hbm [shape: f32[2,8,64], index: 2, kind: output, shape index: {}]  }
   0x1   :  { %v17_v0 = vld [vmem:[%s255_s0 + $0x20] sm:$0xf]  ;;  %v16_v1 = vld [vmem:[%s255_s0 + $0x18] sm:$0xff]  ;;  %v159_v2 = vld [vmem:[%s255_s0 + $0x48] sm:$0xf] }
   0x2   :  { %153 = vmatpush.msk.msra.mxu0 %vm22_vm0, %v17_v0  ;;  %v15_v3 = vld [vmem:[%s255_s0 + $0x10] sm:$0xff]  ;;  %160 = vmatpush.msk.msra.mxu1 %vm22_vm0, %v159_v2  ;;  %v158_v4 = vld [vmem:[%s255_s0 + $0x40] sm:$0xff]  ;;  %v157_v5 = vld [vmem:[%s255_s0 + $0x38] sm:$0xff] }
   0x4   :  { %38 = vmatpush.msra.mxu0 %v16_v1 }
   0x5   :  { %7 = vsyncpa [#allocation3], 0  ;;  %v14_v6 = vld [vmem:[%s255_s0 + $0x8] sm:$0xff]  ;;  %97 = vmatpush.msra.mxu1 %v158_v4  ;;  %v156_v7 = vld [vmem:[%s255_s0 + $0x30] sm:$0xff]  ;;  %vm18_vm1 = vcmask 293888   ;;  %vm46_vm2 = vcmask 523264  }
   0x6   :  { %39 = vmatpush.msra.mxu0 %v15_v3  ;;  %v13_v8 = vld [vmem:[%s255_s0] sm:$0xff]  ;;  %v155_v10 = vld [vmem:[%s255_s0 + $0x28] sm:$0xff]  ;;  %s195_s0 = smov [#allocation2]   ;;  %s141_s5 = sshll.u32 %s257_s2, 4  ;;  %s142_s5 = int_to_ptr.hbm [resolvable:$true] %s141_s5 }
   0x7   :  { %98 = vmatpush.msra.mxu1 %v157_v5  ;;  %v12_v9 = vld [vmem:[%s256_s1] sm:$0xff]  ;;  %s139_s1 = sshll.u32 %s195_s0, 4  ;;  %s196_s6 = smov 128   ;;  %s140_s1 = int_to_ptr.vmem [resolvable:$true] %s139_s1 }
   0x8   :  { %40 = vmatpush.msra.mxu0 %v14_v6  ;;  %s197_s7 = smov 8  }
   0x9   :  { %99 = vmatpush.msra.mxu1 %v156_v7 }
   0xa   :  { %41 = vmatpush.msra.mxu0 %v13_v8 }
   0xb   :  { %154 = vmatmul.msk.f32.vlgmr.msra.gmra.mxu0 %vm18_vm1, %v12_v9  ;;  %100 = vmatpush.msra.mxu1 %v155_v10 }
   0xc   :  { %161 = vmatmul.msk.f32.vlgmr.msra.gmra.mxu1 %vm18_vm1, %v12_v9 }
  0x88   :  { %v43_v11 = vpop.f32.mrf.mxu0 }
  0x89   :  { %v47_v12 = vsel %vm46_vm2, %v43_v11, 0.0  ;;  %v50_v13 = vmul.f32 %v43_v11, %v43_v11  ;;  %v102_v14 = vpop.f32.mrf.mxu1 }
  0x8a   :  { %48 = vadd.xlane.f32.xlu0 %v47_v12  ;;  %v108_v16 = vmul.f32 %v102_v14, %v102_v14  ;;  %v105_v17 = vsel %vm46_vm2, %v102_v14, 0.0 }
  0x8b   :  { %v51_v15 = vsel %vm46_vm2, %v50_v13, 0.0 }
  0x8c   :  { %52 = vadd.xlane.f32.xlu1 %v51_v15  ;;  %v109_v18 = vsel %vm46_vm2, %v108_v16, 0.0 }
  0x92   :  { %106 = vadd.xlane.f32.xlu0 %v105_v17 }
  0x94   :  { %110 = vadd.xlane.f32.xlu1 %v109_v18 }
  0xfd   :  { %v49_v19 = vpop.xlane.xlu0 %48 }
  0xfe   :  { %v54_v20 = vmul.f32 0.015625, %v49_v19 }
  0xff   :  { %v53_v21 = vpop.xlane.xlu1 %52 }
 0x100   :  { %v56_v22 = vmul.f32 %v54_v20, %v54_v20  ;;  %v55_v23 = vmul.f32 0.015625, %v53_v21  ;;  %v59_v42 = vsub.f32 %v43_v11, %v54_v20 }
 0x102   :  { %v57_v24 = vsub.f32 %v55_v23, %v56_v22 }
 0x104   :  { %v58_v25 = vmax.f32 %v57_v24, 0.0 }
 0x105   :  { %v107_v26 = vpop.xlane.xlu0 %106 }
 0x106   :  { %v60_v27 = vadd.f32 1e-05, %v58_v25  ;;  %v112_v28 = vmul.f32 0.015625, %v107_v26 }
 0x107   :  { %v111_v29 = vpop.xlane.xlu1 %110 }
 0x108   :  { %165 = vrsqrt.f32 %v60_v27  ;;  %v114_v30 = vmul.f32 %v112_v28, %v112_v28  ;;  %v113_v31 = vmul.f32 0.015625, %v111_v29  ;;  %vm67_vm4 = vweird.f32 %v60_v27 }
 0x109   :  { %v117_v52 = vsub.f32 %v102_v14, %v112_v28 }
 0x10a   :  { %v115_v32 = vsub.f32 %v113_v31, %v114_v30 }
 0x10c   :  { %v116_v33 = vmax.f32 %v115_v32, 0.0 }
 0x10e   :  { %v166_v34 = vpop.eup %165  ;;  %v118_v36 = vadd.f32 1e-05, %v116_v33 }
 0x10f   :  { %v62_v35 = vmul.f32 %v166_v34, %v60_v27  ;;  %vm68_vm3 = vweird.f32 %v166_v34 }
 0x110   :  { %167 = vrsqrt.f32 %v118_v36  ;;  %vm69_vm5 = vmor %vm67_vm4, %vm68_vm3  ;;  %vm125_vm8 = vweird.f32 %v118_v36 }
 0x111   :  { %v63_v37 = vmul.f32 %v166_v34, %v62_v35 }
 0x113   :  { %v64_v38 = vmul.f32 0.5, %v63_v37 }
 0x115   :  { %v65_v39 = vsub.f32 1.5, %v64_v38 }
 0x116   :  { %v168_v40 = vpop.eup %167 }
 0x117   :  { %v66_v41 = vmul.f32 %v166_v34, %v65_v39  ;;  %v120_v43 = vmul.f32 %v168_v40, %v118_v36  ;;  %vm126_vm7 = vweird.f32 %v168_v40 }
 0x118   :  { %vm127_vm9 = vmor %vm125_vm8, %vm126_vm7 }
 0x119   :  { %v70_v44 = vsel %vm69_vm5, %v166_v34, %v66_v41  ;;  %v121_v46 = vmul.f32 %v168_v40, %v120_v43 }
 0x11a   :  { %v71_v45 = vmul.f32 %v70_v44, %v59_v42 }
 0x11b   :  { %v122_v48 = vmul.f32 0.5, %v121_v46 }
 0x11c   :  { %v73_v47 = vmul.f32 0.2, %v71_v45  ;;  %vm72_vm6 = vcmp.ge.f32.partialorder %v71_v45, 0.0 }
 0x11d   :  { %v123_v49 = vsub.f32 1.5, %v122_v48 }
 0x11e   :  { %v74_v50 = vsel %vm72_vm6, %v71_v45, %v73_v47 }
 0x11f   :  { %75 = vst.msk [vmem:[#allocation2] sm:$0xff] %vm46_vm2, %v74_v50  ;;  %v124_v51 = vmul.f32 %v168_v40, %v123_v49 }
 0x121   :  { %v128_v53 = vsel %vm127_vm9, %v168_v40, %v124_v51 }
 0x122   :  { %v129_v54 = vmul.f32 %v128_v53, %v117_v52 }
 0x124   :  { %v131_v55 = vmul.f32 0.2, %v129_v54  ;;  %vm130_vm10 = vcmp.ge.f32.partialorder %v129_v54, 0.0 }
 0x126   :  { %v132_v56 = vsel %vm130_vm10, %v129_v54, %v131_v55 }
 0x127   :  { %134 = vst.msk [vmem:[#allocation2 + $0x8] sm:$0xff] %vm46_vm2, %v132_v56 }
 0x128   :  { %147 = dma.vmem_to_hbm [thread:$0]  %s140_s1, 256, %s142_s5, [#allocation3], %s196_s6, %s196_s6, %s197_s7  }
 0x129   :  { %193 = dma.done.wait [#allocation3], 256  }
 0x12a   :  { %194 = vsyncadd [#allocation3], 4294967040 }
 0x12b   :  { %152 = vsyncpa [#allocation3], 1 }

</bundles_post_ra>
